<compile_context>
chip_gen: v7x
topology: tpu7x:2x2x1
jax: 0.10.0
libtpu: 0.0.40
codegen_flags: <defaults>
</compile_context>

<pallas_src>
import math
import functools

import jax
import jax.numpy as jnp
from jax.experimental import pallas as pl
from jax.experimental.pallas import tpu as pltpu

# Budget below v7x's 64 MiB physical VMEM; also raises v5e's 16 MiB default.
_VMEM_LIMIT = 48 * 1024 * 1024


# ------------------------------ tiling helper ------------------------------

def _tile(dim, target):
    """Largest 128-multiple tile <= target that divides dim, else the full dim
    (small dims only) — fail loudly instead of silently making a huge block."""
    if dim <= target:
        return dim
    t = (target // 128) * 128
    while t >= 128:
        if dim % t == 0:
            return t
        t -= 128
    if dim <= 2048:
        return dim
    raise ValueError(
        f"dimension {dim} has no 128-multiple tile <= {target}; pad it first")


# ----------------------------- Pallas kernels ------------------------------

def _ln(x_ref, lnw_ref, lnb_ref):
    """LayerNorm prologue on a full-feature-width tile (f32)."""
    x = x_ref[...].astype(jnp.float32)
    mean = jnp.mean(x, axis=-1, keepdims=True)
    var = jnp.mean(jnp.square(x - mean), axis=-1, keepdims=True)
    xn = (x - mean) * jax.lax.rsqrt(var + 1e-5)
    return xn * lnw_ref[...] + lnb_ref[...]


def _ln_qkv_kernel(x_ref, lnw_ref, lnb_ref, wq_ref, wk_ref, wv_ref,
                   bq_ref, bk_ref, bv_ref, q_ref, k_ref, v_ref, xb_ref):
    """Fused LN1 + qkv projection.  LN'd bf16 activation is computed once per
    row tile (column index j == 0) and cached in VMEM scratch."""
    @pl.when(pl.program_id(1) == 0)
    def _():
        xb_ref[...] = _ln(x_ref, lnw_ref, lnb_ref).astype(jnp.bfloat16)

    xb = xb_ref[...]
    q_ref[...] = (jnp.dot(xb, wq_ref[...], preferred_element_type=jnp.float32)
                  + bq_ref[...]).astype(q_ref.dtype)
    k_ref[...] = (jnp.dot(xb, wk_ref[...], preferred_element_type=jnp.float32)
                  + bk_ref[...]).astype(k_ref.dtype)
    v_ref[...] = (jnp.dot(xb, wv_ref[...], preferred_element_type=jnp.float32)
                  + bv_ref[...]).astype(v_ref.dtype)


def _ln_linear_kernel(x_ref, lnw_ref, lnb_ref, w_ref, b_ref, o_ref, xb_ref,
                      *, activation):
    """Fused LN + Linear (+ tanh-GELU epilogue in f32 for the MLP fc).
    LN'd bf16 activation cached across the column grid axis."""
    @pl.when(pl.program_id(1) == 0)
    def _():
        xb_ref[...] = _ln(x_ref, lnw_ref, lnb_ref).astype(jnp.bfloat16)

    y = jnp.dot(xb_ref[...], w_ref[...],
                preferred_element_type=jnp.float32) + b_ref[...]
    if activation == "gelu":
        c = math.sqrt(2.0 / math.pi)
        y = 0.5 * y * (1.0 + jnp.tanh(c * (y + 0.044715 * y * y * y)))
    o_ref[...] = y.astype(o_ref.dtype)


def _matmul_res_kernel(x_ref, w_ref, b_ref, r_ref, o_ref, acc_ref):
    """Tiled matmul with K-accumulator; bias + residual-add epilogue."""
    k = pl.program_id(2)

    @pl.when(k == 0)
    def _():
        acc_ref[...] = jnp.zeros_like(acc_ref)

    acc_ref[...] += jnp.dot(x_ref[...].astype(jnp.bfloat16), w_ref[...],
                            preferred_element_type=jnp.float32)

    @pl.when(k == pl.num_programs(2) - 1)
    def _():
        o_ref[...] = (acc_ref[...] + b_ref[...] + r_ref[...]).astype(o_ref.dtype)


def _ln_lmhead_kernel(x_ref, lnw_ref, lnb_ref, wt_ref, o_ref, xb_ref):
    """Fused final LayerNorm + tied lm_head against the pre-transposed,
    pre-padded (D, Vp) embedding copy.  LN cached across the vocab grid axis."""
    @pl.when(pl.program_id(1) == 0)
    def _():
        xb_ref[...] = _ln(x_ref, lnw_ref, lnb_ref).astype(jnp.bfloat16)

    o_ref[...] = jnp.dot(xb_ref[...], wt_ref[...],
                         preferred_element_type=jnp.float32).astype(o_ref.dtype)


def _ln_lmhead_loss_kernel(x_ref, lnw_ref, lnb_ref, wt_ref, tgt_ref,
                           o_ref, lse_ref, tl_ref,
                           xb_ref, m_ref, l_ref, t_ref, *, v_valid, tv, padded):
    """lm_head with fused cross-entropy bookkeeping: online (max, sum-exp)
    over the vocab grid axis plus a gathered target logit, so the (M, V)
    logits are never re-read from HBM for the loss."""
    j = pl.program_id(1)

    @pl.when(j == 0)
    def _():
        xb_ref[...] = _ln(x_ref, lnw_ref, lnb_ref).astype(jnp.bfloat16)
        m_ref[...] = jnp.full_like(m_ref, -1e30)
        l_ref[...] = jnp.zeros_like(l_ref)
        t_ref[...] = jnp.zeros_like(t_ref)

    s = jnp.dot(xb_ref[...], wt_ref[...], preferred_element_type=jnp.float32)
    o_ref[...] = s.astype(o_ref.dtype)

    col = j * tv + jax.lax.broadcasted_iota(jnp.int32, s.shape, 1)
    # Gather the target logit for rows whose target falls in this vocab tile.
    t_ref[...] += jnp.sum(jnp.where(col == tgt_ref[...], s, 0.0),
                          axis=-1, keepdims=True)

    # Online logsumexp; padded vocab columns (zero logits) are excluded.
    s_lse = jnp.where(col < v_valid, s, -1e30) if padded else s
    m_prev = m_ref[...]
    m_new = jnp.maximum(m_prev, jnp.max(s_lse, axis=-1, keepdims=True))
    l_ref[...] = l_ref[...] * jnp.exp(m_prev - m_new) + jnp.sum(
        jnp.exp(s_lse - m_new), axis=-1, keepdims=True)
    m_ref[...] = m_new

    @pl.when(j == pl.num_programs(1) - 1)
    def _():
        lse_ref[...] = m_ref[...] + jnp.log(l_ref[...])
        tl_ref[...] = t_ref[...]


def _flash_attn_kernel(qi_tbl_ref, ki_tbl_ref, q_ref, k_ref, v_ref, o_ref,
                       m_ref, l_ref, acc_ref, *, n_head, scale, tq, tk):
    """Causal flash attention.  The flat grid axis enumerates only
    lower-triangular (qi, ki) blocks (scalar-prefetch tables); heads are
    handled by static lane slices (no HBM head transposes).  Blocks strictly
    below the diagonal take a mask-free fast path."""
    t = pl.program_id(1)
    qi = qi_tbl_ref[t]
    ki = ki_tbl_ref[t]
    D = q_ref.shape[2]
    hd = D // n_head
    q_start = qi * tq
    k_start = ki * tk

    @pl.when(ki == 0)
    def _():
        # -1e30 init is safe only because causality guarantees at least one
        # unmasked column per query row (the diagonal element).
        m_ref[...] = jnp.full_like(m_ref, -1e30)
        l_ref[...] = jnp.zeros_like(l_ref)
        acc_ref[...] = jnp.zeros_like(acc_ref)

    q = (q_ref[0].astype(jnp.float32) * scale).astype(jnp.bfloat16)   # (tq, D)
    kk = k_ref[0].astype(jnp.bfloat16)                                # (tk, D)
    vv = v_ref[0].astype(jnp.bfloat16)                                # (tk, D)

    def process(mask):
        for h in range(n_head):
            sl = slice(h * hd, (h + 1) * hd)
            s = jax.lax.dot_general(
                q[:, sl], kk[:, sl],
                dimension_numbers=(((1,), (1,)), ((), ())),
                preferred_element_type=jnp.float32)                   # (tq, tk)
            if mask is not None:
                s = jnp.where(mask, s, -1e30)
            m_prev = m_ref[h]                                         # (tq, 1)
            m_new = jnp.maximum(m_prev, jnp.max(s, axis=-1, keepdims=True))
            alpha = jnp.exp(m_prev - m_new)
            p = jnp.exp(s - m_new)
            l_ref[h] = alpha * l_ref[h] + jnp.sum(p, axis=-1, keepdims=True)
            acc_ref[:, sl] = alpha * acc_ref[:, sl] + jnp.dot(
                p.astype(jnp.bfloat16), vv[:, sl],
                preferred_element_type=jnp.float32)
            m_ref[h] = m_new

    # A block needs masking only if it touches the diagonal.
    needs_mask = (k_start + tk - 1) > q_start

    @pl.when(needs_mask)
    def _():
        row = q_start + jax.lax.broadcasted_iota(jnp.int32, (tq, tk), 0)
        col = k_start + jax.lax.broadcasted_iota(jnp.int32, (tq, tk), 1)
        process(col <= row)

    @pl.when(jnp.logical_not(needs_mask))
    def _():
        process(None)                     # mask-free fast path

    last_ki = (q_start + tq - 1) // tk
    @pl.when(ki == last_ki)
    def _():
        for h in range(n_head):
            sl = slice(h * hd, (h + 1) * hd)
            inv = pl.reciprocal(l_ref[h], approx=True)                # EUP recip
            acc_ref[:, sl] = acc_ref[:, sl] * inv
        o_ref[0] = acc_ref[...].astype(o_ref.dtype)   # single lane-dense store


# ------------------------------- wrappers -----------------------------------

def ln_qkv(x, lnw, lnb, wq, wk, wv, bq, bk, bv, tm=512, tn=512):
    M, D = x.shape
    tm = _tile(M, tm)
    tn = _tile(D, tn)
    x_spec = pl.BlockSpec((tm, D), lambda i, j: (i, 0))
    ln_spec = pl.BlockSpec((1, D), lambda i, j: (0, 0))
    w_spec = pl.BlockSpec((D, tn), lambda i, j: (0, j))
    b_spec = pl.BlockSpec((1, tn), lambda i, j: (0, j))
    o_spec = pl.BlockSpec((tm, tn), lambda i, j: (i, j))
    out_sd = jax.ShapeDtypeStruct((M, D), jnp.bfloat16)
    ce = pl.CostEstimate(flops=int(6 * M * D * D),
                         transcendentals=0,
                         bytes_accessed=int(M * D * 4 + 6 * D * D + 6 * M * D))
    return pl.pallas_call(
        _ln_qkv_kernel,
        grid=(M // tm, D // tn),
        in_specs=[x_spec, ln_spec, ln_spec, w_spec, w_spec, w_spec,
                  b_spec, b_spec, b_spec],
        out_specs=[o_spec, o_spec, o_spec],
        out_shape=[out_sd, out_sd, out_sd],
        scratch_shapes=[pltpu.VMEM((tm, D), jnp.bfloat16)],
        compiler_params=pltpu.CompilerParams(
            dimension_semantics=("parallel", "arbitrary"),
            vmem_limit_bytes=_VMEM_LIMIT),
        cost_estimate=ce,
    )(x, lnw.reshape(1, D), lnb.reshape(1, D), wq, wk, wv,
      bq.reshape(1, D), bk.reshape(1, D), bv.reshape(1, D))


def ln_linear(x, lnw, lnb, w, b, activation="none", tm=512, tn=512,
              out_dtype=jnp.bfloat16):
    M, D = x.shape
    _, N = w.shape
    tm = _tile(M, tm)
    tn = _tile(N, tn)
    ce = pl.CostEstimate(flops=int(2 * M * N * D),
                         transcendentals=int(M * N if activation == "gelu" else 0),
                         bytes_accessed=int(M * D * 4 + D * N * 2 + M * N * 2))
    return pl.pallas_call(
        functools.partial(_ln_linear_kernel, activation=activation),
        grid=(M // tm, N // tn),
        in_specs=[pl.BlockSpec((tm, D), lambda i, j: (i, 0)),
                  pl.BlockSpec((1, D), lambda i, j: (0, 0)),
                  pl.BlockSpec((1, D), lambda i, j: (0, 0)),
                  pl.BlockSpec((D, tn), lambda i, j: (0, j)),
                  pl.BlockSpec((1, tn), lambda i, j: (0, j))],
        out_specs=pl.BlockSpec((tm, tn), lambda i, j: (i, j)),
        out_shape=jax.ShapeDtypeStruct((M, N), out_dtype),
        scratch_shapes=[pltpu.VMEM((tm, D), jnp.bfloat16)],
        compiler_params=pltpu.CompilerParams(
            dimension_semantics=("parallel", "arbitrary"),
            vmem_limit_bytes=_VMEM_LIMIT),
        cost_estimate=ce,
    )(x, lnw.reshape(1, D), lnb.reshape(1, D), w, b.reshape(1, N))


def linear_residual(x, w, b, res, tm=512, tn=512, tk=512):
    M, K = x.shape
    _, N = w.shape
    tm = _tile(M, tm)
    tn = _tile(N, tn)
    tk = _tile(K, tk)
    ce = pl.CostEstimate(flops=int(2 * M * N * K),
                         transcendentals=0,
                         bytes_accessed=int(M * K * 2 + K * N * 2 + 2 * M * N * 4))
    # TODO(synk): on v5e consider pipeline_mode=pl.Buffered(3) on the weight
    # BlockSpec to hide the lower HBM bandwidth.
    return pl.pallas_call(
        _matmul_res_kernel,
        grid=(M // tm, N // tn, K // tk),
        in_specs=[pl.BlockSpec((tm, tk), lambda i, j, k: (i, k)),
                  pl.BlockSpec((tk, tn), lambda i, j, k: (k, j)),
                  pl.BlockSpec((1, tn), lambda i, j, k: (0, j)),
                  pl.BlockSpec((tm, tn), lambda i, j, k: (i, j))],
        out_specs=pl.BlockSpec((tm, tn), lambda i, j, k: (i, j)),
        out_shape=jax.ShapeDtypeStruct((M, N), jnp.float32),
        scratch_shapes=[pltpu.VMEM((tm, tn), jnp.float32)],
        compiler_params=pltpu.CompilerParams(
            dimension_semantics=("parallel", "parallel", "arbitrary"),
            vmem_limit_bytes=_VMEM_LIMIT),
        cost_estimate=ce,
    )(x, w, b.reshape(1, N), res)


def lm_head(x, lnw, lnb, wte_t, v_valid, targets=None, tm=512, tv=512):
    """Final LN + tied lm_head against the pre-transposed / pre-padded (D, Vp)
    embedding.  With targets, also returns (lse, target_logit) per row so the
    loss never re-reads the logits from HBM."""
    M, D = x.shape
    Vp = wte_t.shape[1]
    tm = _tile(M, tm)
    tv = _tile(Vp, tv)
    grid = (M // tm, Vp // tv)
    x_spec = pl.BlockSpec((tm, D), lambda i, j: (i, 0))
    ln_spec = pl.BlockSpec((1, D), lambda i, j: (0, 0))
    w_spec = pl.BlockSpec((D, tv), lambda i, j: (0, j))
    o_spec = pl.BlockSpec((tm, tv), lambda i, j: (i, j))
    col_spec = pl.BlockSpec((tm, 1), lambda i, j: (i, 0))
    cparams = pltpu.CompilerParams(
        dimension_semantics=("parallel", "arbitrary"),
        vmem_limit_bytes=_VMEM_LIMIT)
    ce = pl.CostEstimate(flops=int(2 * M * Vp * D),
                         transcendentals=0,
                         bytes_accessed=int(M * D * 4 + Vp * D * 2 + M * Vp * 4))

    if targets is None:
        logits = pl.pallas_call(
            _ln_lmhead_kernel,
            grid=grid,
            in_specs=[x_spec, ln_spec, ln_spec, w_spec],
            out_specs=o_spec,
            out_shape=jax.ShapeDtypeStruct((M, Vp), jnp.float32),
            scratch_shapes=[pltpu.VMEM((tm, D), jnp.bfloat16)],
            compiler_params=cparams, cost_estimate=ce,
        )(x, lnw.reshape(1, D), lnb.reshape(1, D), wte_t)
        if Vp != v_valid:
            logits = logits[:, :v_valid]
        return logits, None, None

    logits, lse, tl = pl.pallas_call(
        functools.partial(_ln_lmhead_loss_kernel, v_valid=v_valid, tv=tv,
                          padded=(Vp != v_valid)),
        grid=grid,
        in_specs=[x_spec, ln_spec, ln_spec, w_spec, col_spec],
        out_specs=[o_spec, col_spec, col_spec],
        out_shape=[jax.ShapeDtypeStruct((M, Vp), jnp.float32),
                   jax.ShapeDtypeStruct((M, 1), jnp.float32),
                   jax.ShapeDtypeStruct((M, 1), jnp.float32)],
        scratch_shapes=[pltpu.VMEM((tm, D), jnp.bfloat16),
                        pltpu.VMEM((tm, 1), jnp.float32),
                        pltpu.VMEM((tm, 1), jnp.float32),
                        pltpu.VMEM((tm, 1), jnp.float32)],
        compiler_params=cparams, cost_estimate=ce,
    )(x, lnw.reshape(1, D), lnb.reshape(1, D), wte_t, targets)
    if Vp != v_valid:
        logits = logits[:, :v_valid]
    return logits, lse, tl


def flash_attention(q, k, v, n_head, tq=256, tk=128, out_dtype=jnp.bfloat16):
    B, T, D = q.shape
    hd = D // n_head
    tq = _tile(T, tq)
    tk = _tile(T, tk)
    nq, nk = T // tq, T // tk
    scale = 1.0 / math.sqrt(hd)

    # Enumerate only causally-needed (qi, ki) blocks — no wasted grid steps.
    qi_list, ki_list = [], []
    for qi in range(nq):
        last = min((qi * tq + tq - 1) // tk, nk - 1)
        for ki in range(last + 1):
            qi_list.append(qi)
            ki_list.append(ki)
    qi_tbl = jnp.asarray(qi_list, dtype=jnp.int32)
    ki_tbl = jnp.asarray(ki_list, dtype=jnp.int32)
    n_steps = len(qi_list)

    def q_map(b, t, qi_tbl, ki_tbl):
        return (b, qi_tbl[t], 0)

    def kv_map(b, t, qi_tbl, ki_tbl):
        return (b, ki_tbl[t], 0)

    ce = pl.CostEstimate(
        flops=int(4 * B * n_steps * tq * tk * hd * n_head),
        transcendentals=int(B * n_steps * n_head * tq * tk),
        bytes_accessed=int(B * n_steps * (2 * tq + 2 * tk) * D * 2))

    grid_spec = pltpu.PrefetchScalarGridSpec(
        num_scalar_prefetch=2,
        grid=(B, n_steps),
        in_specs=[pl.BlockSpec((1, tq, D), q_map),
                  pl.BlockSpec((1, tk, D), kv_map),
                  pl.BlockSpec((1, tk, D), kv_map)],
        out_specs=pl.BlockSpec((1, tq, D), q_map),
        scratch_shapes=[pltpu.VMEM((n_head, tq, 1), jnp.float32),
                        pltpu.VMEM((n_head, tq, 1), jnp.float32),
                        pltpu.VMEM((tq, D), jnp.float32)])

    return pl.pallas_call(
        functools.partial(_flash_attn_kernel, n_head=n_head, scale=scale,
                          tq=tq, tk=tk),
        grid_spec=grid_spec,
        out_shape=jax.ShapeDtypeStruct((B, T, D), out_dtype),
        compiler_params=pltpu.CompilerParams(
            dimension_semantics=("parallel", "arbitrary"),
            vmem_limit_bytes=_VMEM_LIMIT),
        cost_estimate=ce,
    )(qi_tbl, ki_tbl, q, k, v)


# --------------------------- parameter creation -----------------------------

def init_params(key, cfg):
    std = 0.02
    proj_std = std * (2 * cfg["n_layer"]) ** -0.5  # NANOGPT_SCALE_INIT
    D = cfg["n_embd"]
    V = cfg["vocab_size"]
    BS = cfg["block_size"]

    n_keys = 2 + cfg["n_layer"] * 6
    keys = iter(jax.random.split(key, n_keys))

    def nrm(k, shape, s):
        return (jax.random.normal(k, shape, jnp.float32) * s).astype(jnp.bfloat16)

    wte = nrm(next(keys), (V, D), std)                               # tied lm_head
    # One-time pre-transposed + pre-padded copy for the lm_head contraction:
    # avoids a per-forward jnp.pad and any per-tile transposes in the kernel.
    Vp = (-(-V // 512) * 512) if V > 512 else V
    wte_t = wte.T
    if Vp != V:
        wte_t = jnp.zeros((D, Vp), jnp.bfloat16).at[:, :V].set(wte_t)

    params = {
        "wte": wte,
        "wte_t": wte_t,
        "wpe": jax.random.normal(next(keys), (BS, D), jnp.float32) * std,
        "lnf_w": jnp.ones((D,), jnp.float32),
        "lnf_b": jnp.zeros((D,), jnp.float32),
        "blocks": [],
    }
    for _ in range(cfg["n_layer"]):
        blk = {
            "ln1_w": jnp.ones((D,), jnp.float32),
            "ln1_b": jnp.zeros((D,), jnp.float32),
            # c_attn split into q/k/v (columns of the (D, 3D) weight)
            "wq": nrm(next(keys), (D, D), std),
            "wk": nrm(next(keys), (D, D), std),
            "wv": nrm(next(keys), (D, D), std),
            "bq": jnp.zeros((D,), jnp.float32),
            "bk": jnp.zeros((D,), jnp.float32),
            "bv": jnp.zeros((D,), jnp.float32),
            "attn_proj_w": nrm(next(keys), (D, D), proj_std),
            "attn_proj_b": jnp.zeros((D,), jnp.float32),
            "ln2_w": jnp.ones((D,), jnp.float32),
            "ln2_b": jnp.zeros((D,), jnp.float32),
            "fc_w": nrm(next(keys), (D, 4 * D), std),
            "fc_b": jnp.zeros((4 * D,), jnp.float32),
            "fcproj_w": nrm(next(keys), (4 * D, D), proj_std),
            "fcproj_b": jnp.zeros((D,), jnp.float32),
        }
        params["blocks"].append(blk)
    return params


# ------------------------------- forward pass --------------------------------

def gpt_forward(params, idx, cfg, targets=None):
    B, T = idx.shape
    D = cfg["n_embd"]
    H = cfg["n_head"]
    V = cfg["vocab_size"]
    assert T <= cfg["block_size"]

    # embeddings (glue: gathers in plain JAX)
    tok_emb = jnp.take(params["wte"], idx, axis=0).astype(jnp.float32)   # (B, T, D)
    pos_emb = params["wpe"][:T]                                          # (T, D)
    x = (tok_emb + pos_emb[None, :, :]).reshape(B * T, D)                # f32 residual

    for blk in params["blocks"]:
        # ---- attention sub-block: LN1+qkv fused (bf16), flash attn, proj+residual ----
        q, k, v = ln_qkv(x, blk["ln1_w"], blk["ln1_b"],
                         blk["wq"], blk["wk"], blk["wv"],
                         blk["bq"], blk["bk"], blk["bv"])
        y = flash_attention(q.reshape(B, T, D), k.reshape(B, T, D),
                            v.reshape(B, T, D), n_head=H)
        x = linear_residual(y.reshape(B * T, D),
                            blk["attn_proj_w"], blk["attn_proj_b"], x)

        # ---- MLP sub-block: LN2+fc+GELU fused (bf16 hidden), fcproj+residual fused ----
        h = ln_linear(x, blk["ln2_w"], blk["ln2_b"],
                      blk["fc_w"], blk["fc_b"], activation="gelu")
        x = linear_residual(h, blk["fcproj_w"], blk["fcproj_b"], x)

    # final LN fused into the tied lm_head; cross-entropy stats fused when
    # targets are given (logits are still emitted for parity with the spec).
    # TODO(synk): for pure generation, slice x to the last token per sequence
    # before lm_head to cut its cost by a factor of T.
    tgt2d = None
    if targets is not None:
        tgt2d = targets.reshape(B * T, 1).astype(jnp.int32)
    logits_flat, lse, tgt_logit = lm_head(x, params["lnf_w"], params["lnf_b"],
                                          params["wte_t"], V, targets=tgt2d)
    logits = logits_flat.reshape(B, T, V)

    loss = None
    if targets is not None:
        loss = jnp.mean(lse - tgt_logit)
    return logits, loss


# ----------------------------------- main ------------------------------------

if __name__ == "__main__":
    cfg = dict(block_size=16, vocab_size=128, n_layer=2, n_head=2, n_embd=32)
    B, T = 2, 8

    key = jax.random.PRNGKey(0)
    pkey, ikey, tkey = jax.random.split(key, 3)
    params = init_params(pkey, cfg)
    idx = jax.random.randint(ikey, (B, T), 0, cfg["vocab_size"], dtype=jnp.int32)
    targets = jax.random.randint(tkey, (B, T), 0, cfg["vocab_size"], dtype=jnp.int32)

    # inference path (no targets)
    logits, _ = gpt_forward(params, idx, cfg, targets=None)
    logits = jax.block_until_ready(logits)
    assert logits.shape == (B, T, cfg["vocab_size"])
    assert bool(jnp.all(jnp.isfinite(logits)))

    # training path (fused cross-entropy)
    logits2, loss = gpt_forward(params, idx, cfg, targets=targets)
    loss = jax.block_until_ready(loss)
    assert bool(jnp.isfinite(loss))
    # sanity: fused loss matches a plain-JAX cross entropy on the same logits
    lse_ref = jax.nn.logsumexp(logits2, axis=-1)
    tl_ref = jnp.take_along_axis(logits2, targets[..., None], axis=-1)[..., 0]
    loss_ref = jnp.mean(lse_ref - tl_ref)
    assert abs(float(loss) - float(loss_ref)) < 1e-2

    print("KERNEL_OK")
</pallas_src>

<mosaic_0001>
module attributes {stable_mosaic.version = 11 : i64} {
  func.func @_ln_qkv_kernel(%arg0: i32, %arg1: i32, %arg2: memref<16x32xf32, #tpu.memory_space<vmem>>, %arg3: memref<1x32xf32, #tpu.memory_space<vmem>>, %arg4: memref<1x32xf32, #tpu.memory_space<vmem>>, %arg5: memref<32x32xbf16, #tpu.memory_space<vmem>>, %arg6: memref<32x32xbf16, #tpu.memory_space<vmem>>, %arg7: memref<32x32xbf16, #tpu.memory_space<vmem>>, %arg8: memref<1x32xf32, #tpu.memory_space<vmem>>, %arg9: memref<1x32xf32, #tpu.memory_space<vmem>>, %arg10: memref<1x32xf32, #tpu.memory_space<vmem>>, %arg11: memref<16x32xbf16, #tpu.memory_space<vmem>>, %arg12: memref<16x32xbf16, #tpu.memory_space<vmem>>, %arg13: memref<16x32xbf16, #tpu.memory_space<vmem>>, %arg14: memref<16x32xbf16, #tpu.memory_space<vmem>>) attributes {dimension_semantics = [#tpu.dimension_semantics<parallel>, #tpu.dimension_semantics<arbitrary>], iteration_bounds = array<i64: 1, 1>, scalar_prefetch = 0 : i64, scratch_operands = 1 : i64, tpu.core_type = #tpu.core_type<tc>, window_params = [{transform_indices = @transform_0, window_bounds = array<i64: 16, 32>}, {pipeline_mode = #tpu.pipeline_mode<synchronous>, transform_indices = @transform_1, window_bounds = array<i64: 1, 32>}, {pipeline_mode = #tpu.pipeline_mode<synchronous>, transform_indices = @transform_2, window_bounds = array<i64: 1, 32>}, {transform_indices = @transform_3, window_bounds = array<i64: 32, 32>}, {transform_indices = @transform_4, window_bounds = array<i64: 32, 32>}, {transform_indices = @transform_5, window_bounds = array<i64: 32, 32>}, {transform_indices = @transform_6, window_bounds = array<i64: 1, 32>}, {transform_indices = @transform_7, window_bounds = array<i64: 1, 32>}, {transform_indices = @transform_8, window_bounds = array<i64: 1, 32>}, {transform_indices = @transform_9, window_bounds = array<i64: 16, 32>}, {transform_indices = @transform_10, window_bounds = array<i64: 16, 32>}, {transform_indices = @transform_11, window_bounds = array<i64: 16, 32>}]} {
    %c0_i32 = arith.constant 0 : i32
    %0 = arith.cmpi eq, %arg1, %c0_i32 : i32
    %1 = arith.extui %0 : i1 to i32
    %c0_i32_0 = arith.constant 0 : i32
    %2 = arith.cmpi ne, %1, %c0_i32_0 : i32
    scf.if %2 {
      %c0_22 = arith.constant 0 : index
      %c0_23 = arith.constant 0 : index
      %25 = vector.load %arg2[%c0_22, %c0_23] : memref<16x32xf32, #tpu.memory_space<vmem>>, vector<16x32xf32>
      %cst_24 = arith.constant dense<0.000000e+00> : vector<16xf32>
      %26 = vector.multi_reduction <add>, %25, %cst_24 [1] : vector<16x32xf32> to vector<16xf32>
      %27 = vector.shape_cast %26 : vector<16xf32> to vector<16x1xf32>
      %cst_25 = arith.constant 3.200000e+01 : f32
      %28 = vector.broadcast %cst_25 : f32 to vector<16x1xf32>
      %29 = arith.divf %27, %28 : vector<16x1xf32>
      %30 = vector.broadcast %29 : vector<16x1xf32> to vector<16x32xf32>
      %31 = arith.subf %25, %30 : vector<16x32xf32>
      %32 = arith.mulf %31, %31 : vector<16x32xf32>
      %cst_26 = arith.constant dense<0.000000e+00> : vector<16xf32>
      %33 = vector.multi_reduction <add>, %32, %cst_26 [1] : vector<16x32xf32> to vector<16xf32>
      %34 = vector.shape_cast %33 : vector<16xf32> to vector<16x1xf32>
      %cst_27 = arith.constant 3.200000e+01 : f32
      %35 = vector.broadcast %cst_27 : f32 to vector<16x1xf32>
      %36 = arith.divf %34, %35 : vector<16x1xf32>
      %37 = vector.broadcast %29 : vector<16x1xf32> to vector<16x32xf32>
      %38 = arith.subf %25, %37 : vector<16x32xf32>
      %cst_28 = arith.constant 9.99999974E-6 : f32
      %39 = vector.broadcast %cst_28 : f32 to vector<16x1xf32>
      %40 = arith.addf %36, %39 : vector<16x1xf32>
      %41 = math.rsqrt %40 : vector<16x1xf32>
      %42 = vector.broadcast %41 : vector<16x1xf32> to vector<16x32xf32>
      %43 = arith.mulf %38, %42 : vector<16x32xf32>
      %c0_29 = arith.constant 0 : index
      %c0_30 = arith.constant 0 : index
      %44 = vector.load %arg3[%c0_29, %c0_30] : memref<1x32xf32, #tpu.memory_space<vmem>>, vector<1x32xf32>
      %45 = vector.broadcast %44 : vector<1x32xf32> to vector<16x32xf32>
      %46 = arith.mulf %43, %45 : vector<16x32xf32>
      %c0_31 = arith.constant 0 : index
      %c0_32 = arith.constant 0 : index
      %47 = vector.load %arg4[%c0_31, %c0_32] : memref<1x32xf32, #tpu.memory_space<vmem>>, vector<1x32xf32>
      %48 = vector.broadcast %47 : vector<1x32xf32> to vector<16x32xf32>
      %49 = arith.addf %46, %48 : vector<16x32xf32>
      %50 = arith.truncf %49 : vector<16x32xf32> to vector<16x32xbf16>
      %c0_33 = arith.constant 0 : index
      %c0_34 = arith.constant 0 : index
      %51 = vector.load %arg14[%c0_33, %c0_34] : memref<16x32xbf16, #tpu.memory_space<vmem>>, vector<16x32xbf16>
      tpu.vector_store %arg14[%c0_33, %c0_34], %50 {strides = array<i32>} : memref<16x32xbf16, #tpu.memory_space<vmem>>, vector<16x32xbf16>,
    } else {
    }
    %c0 = arith.constant 0 : index
    %c0_1 = arith.constant 0 : index
    %3 = vector.load %arg14[%c0, %c0_1] : memref<16x32xbf16, #tpu.memory_space<vmem>>, vector<16x32xbf16>
    %c0_2 = arith.constant 0 : index
    %c0_3 = arith.constant 0 : index
    %4 = vector.load %arg5[%c0_2, %c0_3] : memref<32x32xbf16, #tpu.memory_space<vmem>>, vector<32x32xbf16>
    %cst = arith.constant dense<0.000000e+00> : vector<16x32xf32>
    %5 = tpu.matmul %3, %4, %cst {dimension_numbers = #tpu.dot_dimension_numbers<[1], [0], [0], [1], [0, 0, 1, 1], [], []>} : vector<16x32xbf16>, vector<32x32xbf16>, vector<16x32xf32> -> vector<16x32xf32>
    %c0_4 = arith.constant 0 : index
    %c0_5 = arith.constant 0 : index
    %6 = vector.load %arg8[%c0_4, %c0_5] : memref<1x32xf32, #tpu.memory_space<vmem>>, vector<1x32xf32>
    %7 = vector.broadcast %6 : vector<1x32xf32> to vector<16x32xf32>
    %8 = arith.addf %5, %7 : vector<16x32xf32>
    %9 = arith.truncf %8 : vector<16x32xf32> to vector<16x32xbf16>
    %c0_6 = arith.constant 0 : index
    %c0_7 = arith.constant 0 : index
    %10 = vector.load %arg11[%c0_6, %c0_7] : memref<16x32xbf16, #tpu.memory_space<vmem>>, vector<16x32xbf16>
    tpu.vector_store %arg11[%c0_6, %c0_7], %9 {strides = array<i32>} : memref<16x32xbf16, #tpu.memory_space<vmem>>, vector<16x32xbf16>,
    %c0_8 = arith.constant 0 : index
    %c0_9 = arith.constant 0 : index
    %11 = vector.load %arg6[%c0_8, %c0_9] : memref<32x32xbf16, #tpu.memory_space<vmem>>, vector<32x32xbf16>
    %cst_10 = arith.constant dense<0.000000e+00> : vector<16x32xf32>
    %12 = tpu.matmul %3, %11, %cst_10 {dimension_numbers = #tpu.dot_dimension_numbers<[1], [0], [0], [1], [0, 0, 1, 1], [], []>} : vector<16x32xbf16>, vector<32x32xbf16>, vector<16x32xf32> -> vector<16x32xf32>
    %c0_11 = arith.constant 0 : index
    %c0_12 = arith.constant 0 : index
    %13 = vector.load %arg9[%c0_11, %c0_12] : memref<1x32xf32, #tpu.memory_space<vmem>>, vector<1x32xf32>
    %14 = vector.broadcast %13 : vector<1x32xf32> to vector<16x32xf32>
    %15 = arith.addf %12, %14 : vector<16x32xf32>
    %16 = arith.truncf %15 : vector<16x32xf32> to vector<16x32xbf16>
    %c0_13 = arith.constant 0 : index
    %c0_14 = arith.constant 0 : index
    %17 = vector.load %arg12[%c0_13, %c0_14] : memref<16x32xbf16, #tpu.memory_space<vmem>>, vector<16x32xbf16>
    tpu.vector_store %arg12[%c0_13, %c0_14], %16 {strides = array<i32>} : memref<16x32xbf16, #tpu.memory_space<vmem>>, vector<16x32xbf16>,
    %c0_15 = arith.constant 0 : index
    %c0_16 = arith.constant 0 : index
    %18 = vector.load %arg7[%c0_15, %c0_16] : memref<32x32xbf16, #tpu.memory_space<vmem>>, vector<32x32xbf16>
    %cst_17 = arith.constant dense<0.000000e+00> : vector<16x32xf32>
    %19 = tpu.matmul %3, %18, %cst_17 {dimension_numbers = #tpu.dot_dimension_numbers<[1], [0], [0], [1], [0, 0, 1, 1], [], []>} : vector<16x32xbf16>, vector<32x32xbf16>, vector<16x32xf32> -> vector<16x32xf32>
    %c0_18 = arith.constant 0 : index
    %c0_19 = arith.constant 0 : index
    %20 = vector.load %arg10[%c0_18, %c0_19] : memref<1x32xf32, #tpu.memory_space<vmem>>, vector<1x32xf32>
    %21 = vector.broadcast %20 : vector<1x32xf32> to vector<16x32xf32>
    %22 = arith.addf %19, %21 : vector<16x32xf32>
    %23 = arith.truncf %22 : vector<16x32xf32> to vector<16x32xbf16>
    %c0_20 = arith.constant 0 : index
    %c0_21 = arith.constant 0 : index
    %24 = vector.load %arg13[%c0_20, %c0_21] : memref<16x32xbf16, #tpu.memory_space<vmem>>, vector<16x32xbf16>
    tpu.vector_store %arg13[%c0_20, %c0_21], %23 {strides = array<i32>} : memref<16x32xbf16, #tpu.memory_space<vmem>>, vector<16x32xbf16>,
    return
  }
  func.func @transform_0(%arg0: i32, %arg1: i32) -> (i32, i32) {
    %c0_i32 = arith.constant 0 : i32
    %c0_i32_0 = arith.constant 0 : i32
    return %arg0, %c0_i32 : i32, i32
  }
  func.func @transform_1(%arg0: i32, %arg1: i32) -> (i32, i32) {
    %c0_i32 = arith.constant 0 : i32
    %c0_i32_0 = arith.constant 0 : i32
    %c0_i32_1 = arith.constant 0 : i32
    return %c0_i32, %c0_i32_0 : i32, i32
  }
  func.func @transform_2(%arg0: i32, %arg1: i32) -> (i32, i32) {
    %c0_i32 = arith.constant 0 : i32
    %c0_i32_0 = arith.constant 0 : i32
    %c0_i32_1 = arith.constant 0 : i32
    return %c0_i32, %c0_i32_0 : i32, i32
  }
  func.func @transform_3(%arg0: i32, %arg1: i32) -> (i32, i32) {
    %c0_i32 = arith.constant 0 : i32
    %c0_i32_0 = arith.constant 0 : i32
    return %c0_i32, %arg1 : i32, i32
  }
  func.func @transform_4(%arg0: i32, %arg1: i32) -> (i32, i32) {
    %c0_i32 = arith.constant 0 : i32
    %c0_i32_0 = arith.constant 0 : i32
    return %c0_i32, %arg1 : i32, i32
  }
  func.func @transform_5(%arg0: i32, %arg1: i32) -> (i32, i32) {
    %c0_i32 = arith.constant 0 : i32
    %c0_i32_0 = arith.constant 0 : i32
    return %c0_i32, %arg1 : i32, i32
  }
  func.func @transform_6(%arg0: i32, %arg1: i32) -> (i32, i32) {
    %c0_i32 = arith.constant 0 : i32
    %c0_i32_0 = arith.constant 0 : i32
    return %c0_i32, %arg1 : i32, i32
  }
  func.func @transform_7(%arg0: i32, %arg1: i32) -> (i32, i32) {
    %c0_i32 = arith.constant 0 : i32
    %c0_i32_0 = arith.constant 0 : i32
    return %c0_i32, %arg1 : i32, i32
  }
  func.func @transform_8(%arg0: i32, %arg1: i32) -> (i32, i32) {
    %c0_i32 = arith.constant 0 : i32
    %c0_i32_0 = arith.constant 0 : i32
    return %c0_i32, %arg1 : i32, i32
  }
  func.func @transform_9(%arg0: i32, %arg1: i32) -> (i32, i32) {
    %c0_i32 = arith.constant 0 : i32
    return %arg0, %arg1 : i32, i32
  }
  func.func @transform_10(%arg0: i32, %arg1: i32) -> (i32, i32) {
    %c0_i32 = arith.constant 0 : i32
    return %arg0, %arg1 : i32, i32
  }
  func.func @transform_11(%arg0: i32, %arg1: i32) -> (i32, i32) {
    %c0_i32 = arith.constant 0 : i32
    return %arg0, %arg1 : i32, i32
  }
}

</mosaic_0001>

<bundles_post_ra>
// kernel: tpu_custom_call.1
= control target key start
LH: loop header
LB: loop body
LE: loop exit
PB: predicated region body
PF: predicated region fallthrough
CT: control target
= control target key end

     0   :  { %17 = vsyncpa [#allocation4], 0  ;;  %s835_s0 = inlined_call_operand.hbm [shape: f32[16,32], index: 0, kind: input, shape index: {}]   ;;  %s836_s1 = inlined_call_operand.vmem [shape: f32[1,32], index: 1, kind: input, shape index: {}]   ;;  %s837_s2 = inlined_call_operand.vmem [shape: f32[1,32], index: 2, kind: input, shape index: {}]   ;;  %s838_s3 = inlined_call_operand.hbm [shape: bf16[32,32], index: 3, kind: input, shape index: {}]   ;;  %s839_s4 = inlined_call_operand.hbm [shape: bf16[32,32], index: 4, kind: input, shape index: {}]   ;;  %s840_s5 = inlined_call_operand.vmem [shape: bf16[32,32], index: 5, kind: input, shape index: {}]   ;;  %s841_s6 = inlined_call_operand.vmem [shape: f32[1,32], index: 6, kind: input, shape index: {}]   ;;  %s842_s7 = inlined_call_operand.vmem [shape: f32[1,32], index: 7, kind: input, shape index: {}]   ;;  %s843_s8 = inlined_call_operand.vmem [shape: f32[1,32], index: 8, kind: input, shape index: {}]   ;;  %s844_s9 = inlined_call_operand.hbm [shape: bf16[16,32], index: 9, kind: output, shape index: {0}]   ;;  %s845_s10 = inlined_call_operand.hbm [shape: bf16[16,32], index: 10, kind: output, shape index: {1}]   ;;  %s846_s11 = inlined_call_operand.hbm [shape: bf16[16,32], index: 11, kind: output, shape index: {2}]  }
   0x1   :  { %18 = vsyncpa [#allocation7], 0 }
   0x2   :  { %19 = vsyncpa [#allocation5], 0 }
   0x3   :  { %20 = vsyncpa [#allocation11], 0  ;;  %s631_s17 = smov [#allocation6]   ;;  %s491_s21 = scalar_lea.hbm %s838_s3, 256 }
   0x4   :  { %s42_s18 = sshll.u32 %s631_s17, 4  ;;  %p492_p0 = scmp.ne.s32.totalorder %s838_s3, %s491_s21  ;;  %s43_s18 = int_to_ptr.vmem [resolvable:$true] %s42_s18 }
   0x5   :  { %p495_p1 = scmp.lt.u32.totalorder %s491_s21, %s838_s3 }
   0x7   :  { %p497_p2 = pnand %p495_p1, %p492_p0 }
   0x9   :  { %500 = shalt.err (!%p497_p2)
}
   0xa   :  { %s501_s26 = scalar_lea.vmem %s43_s18, 256  ;;  %p506_p4 = scmp.lt.s32.totalorder %s43_s18, %s43_s18 }
   0xb   :  { %p502_p3 = scmp.ne.s32.totalorder %s43_s18, %s501_s26  ;;  %p507_p5 = scmp.lt.s32.totalorder %s501_s26, %s501_s26 }
   0xd   :  { %p508_p6 = por %p507_p5, %p506_p4 }
   0xf   :  { %p509_p7 = pnand %p508_p6, %p502_p3 }
  0x11   :  { %512 = shalt.err (!%p509_p7)
}
  0x12   :  { %s632_s27 = smov 64   ;;  %s633_s28 = smov 4  }
  0x13   :  { %48 = dma.hbm_to_vmem [thread:$0]  %s838_s3, 256, %s43_s18, [#allocation7], %s632_s27, %s632_s27, %s633_s28  }
  0x14   :  { %s634_s12 = smov [#allocation3]   ;;  %s513_s16 = scalar_lea.hbm %s835_s0, 256 }
  0x15   :  { %s26_s13 = sshll.u32 %s634_s12, 4  ;;  %p514_p8 = scmp.ne.s32.totalorder %s835_s0, %s513_s16  ;;  %s27_s13 = int_to_ptr.vmem [resolvable:$true] %s26_s13 }
  0x16   :  { %p517_p9 = scmp.lt.u32.totalorder %s513_s16, %s835_s0 }
  0x18   :  { %p519_p10 = pnand %p517_p9, %p514_p8 }
  0x1a   :  { %522 = shalt.err (!%p519_p10)
}
  0x1b   :  { %s523_s22 = scalar_lea.vmem %s27_s13, 256  ;;  %p528_p12 = scmp.lt.s32.totalorder %s27_s13, %s27_s13 }
  0x1c   :  { %p524_p11 = scmp.ne.s32.totalorder %s27_s13, %s523_s22  ;;  %p529_p13 = scmp.lt.s32.totalorder %s523_s22, %s523_s22 }
  0x1e   :  { %p530_p0 = por %p529_p13, %p528_p12 }
  0x20   :  { %p531_p1 = pnand %p530_p0, %p524_p11 }
  0x22   :  { %534 = shalt.err (!%p531_p1)
}
  0x23   :  { %s635_s3 = smov 128   ;;  %s636_s18 = smov 8  }
  0x24   :  { %32 = dma.hbm_to_vmem [thread:$0]  %s835_s0, 256, %s27_s13, [#allocation4], %s635_s3, %s635_s3, %s636_s18  }
  0x25   :  { %s637_s25 = smov [#allocation8]   ;;  %s535_s12 = scalar_lea.hbm %s839_s4, 256 }
  0x26   :  { %s54_s26 = sshll.u32 %s637_s25, 4  ;;  %p536_p2 = scmp.ne.s32.totalorder %s839_s4, %s535_s12  ;;  %s55_s26 = int_to_ptr.vmem [resolvable:$true] %s54_s26 }
  0x27   :  { %p539_p3 = scmp.lt.u32.totalorder %s535_s12, %s839_s4 }
  0x29   :  { %p541_p4 = pnand %p539_p3, %p536_p2 }
  0x2b   :  { %544 = shalt.err (!%p541_p4)
}
  0x2c   :  { %s545_s19 = scalar_lea.vmem %s55_s26, 256  ;;  %p550_p6 = scmp.lt.s32.totalorder %s55_s26, %s55_s26 }
  0x2d   :  { %p546_p5 = scmp.ne.s32.totalorder %s55_s26, %s545_s19  ;;  %p551_p7 = scmp.lt.s32.totalorder %s545_s19, %s545_s19 }
  0x2f   :  { %p552_p8 = por %p551_p7, %p550_p6 }
  0x31   :  { %p553_p9 = pnand %p552_p8, %p546_p5 }
  0x33   :  { %556 = shalt.err (!%p553_p9)
}
  0x34   :  { %60 = dma.hbm_to_vmem [thread:$0]  %s839_s4, 256, %s55_s26, [#allocation7], %s632_s27, %s632_s27, %s633_s28  }
  0x35   :  { %623 = dma.done.wait [#allocation4], 256  }
  0x36   :  { %624 = vsyncadd [#allocation4], 4294967040 }
  0x37   :  { %625 = dma.done.wait [#allocation7], 512  }
  0x38   :  { %626 = vsyncadd [#allocation7], 4294966784  ;;  %vm85_vm0 = vcmask 261120   ;;  %v83_v0 = vld [vmem:[#allocation3] sm:$0xff]  ;;  %v84_v1 = vld [vmem:[#allocation3 + $0x8] sm:$0xff]  ;;  %v638_v16 = vmov 0.0  }
  0x39   :  { %v86_v2 = vsel %vm85_vm0, %v83_v0, 0.0  ;;  %v89_v3 = vsel %vm85_vm0, %v84_v1, 0.0  ;;  %v481_v14 = vld [vmem:[#allocation6] sm:$0xff]   ;;  %v482_v15 = vld [vmem:[#allocation8] sm:$0xff]   ;;  %445 = vmatprep.subr.bf16.mxu0 %v638_v16  ;;  %453 = vmatprep.subr.bf16.mxu1 %v638_v16  ;;  %v483_v17 = vld [vmem:[#allocation6 + $0x8] sm:$0xff]   ;;  %vm639_vm1 = vmmov 0  }
  0x3a   :  { %87 = vadd.xlane.f32.xlu0 %v86_v2  ;;  %446 = vmatpush3.bf16.msra.mxu0 %v481_v14  ;;  %v484_v18 = vld [vmem:[#allocation8 + $0x8] sm:$0xff]   ;;  %v410_v27 = vld [vmem:[%s836_s1] ss:$0 sm:$0xff]  ;;  %v486_v38 = vld [vmem:[%s840_s5 + $0x8] sm:$0xff]   ;;  %vm210_vm2 = vcmask 257024  }
  0x3b   :  { %454 = vmatpush3.bf16.msra.mxu1 %v482_v15  ;;  %447 = vmatprep.subr.bf16.mxu0 %v638_v16  ;;  %v411_v31 = vld [vmem:[%s837_s2] ss:$0 sm:$0xff] }
  0x3c   :  { %455 = vmatprep.subr.bf16.mxu1 %v638_v16  ;;  %449 = vmatprep.mubr.msk.bf16.mxu0 %vm639_vm1, %v638_v16  ;;  %v485_v36 = vld [vmem:[%s840_s5] sm:$0xff]   ;;  %s640_s5 = smov [#allocation10]  }
  0x3d   :  { %457 = vmatprep.mubr.msk.bf16.mxu1 %vm639_vm1, %v638_v16  ;;  %v412_v39 = vld [vmem:[%s841_s6] ss:$0 sm:$0xff]  ;;  %s378_s29 = sshll.u32 %s640_s5, 4  ;;  %s641_s6 = smov [#allocation9]   ;;  %s379_s29 = int_to_ptr.vmem [resolvable:$true] %s378_s29 }
  0x3e   :  { %90 = vadd.xlane.f32.xlu0 %v89_v3  ;;  %448 = vmatpush3.bf16.msra.mxu0 %v483_v17  ;;  %v418_v40 = vld [vmem:[%s842_s7] ss:$0 sm:$0xff]  ;;  %s366_s30 = sshll.u32 %s641_s6, 4  ;;  %s557_s14 = scalar_lea.vmem %s379_s29, 128  ;;  %s779_s30 = int_to_ptr.vmem [resolvable:$true] %s366_s30 }
  0x3f   :  { %456 = vmatpush3.bf16.msra.mxu1 %v484_v18  ;;  %461 = vmatprep.subr.bf16.mxu0 %v638_v16  ;;  %v424_v57 = vld [vmem:[%s843_s8] ss:$0 sm:$0xff]  ;;  %p558_p10 = scmp.ne.s32.totalorder %s379_s29, %s557_s14  ;;  %p562_p11 = scmp.lt.s32.totalorder %s379_s29, %s379_s29 }
  0x40   :  { %p563_p12 = scmp.lt.s32.totalorder %s557_s14, %s557_s14 }
  0x42   :  { %p564_p13 = por %p563_p12, %p562_p11 }
  0x44   :  { %p565_p0 = pnand %p564_p13, %p558_p10 }
  0xc7   :  { %v88_v4 = vpop.xlane.xlu0 %87 }
  0xc8   :  { %v93_v5 = vmul.f32 0.03125, %v88_v4 }
  0xca   :  { %v95_v6 = vsub.f32 %v83_v0, %v93_v5 }
  0xcb   :  { %v91_v7 = vpop.xlane.xlu0 %90 }
  0xcc   :  { %v94_v8 = vmul.f32 0.03125, %v91_v7  ;;  %v97_v9 = vmul.f32 %v95_v6, %v95_v6 }
  0xce   :  { %v96_v10 = vsub.f32 %v84_v1, %v94_v8  ;;  %v99_v11 = vsel %vm85_vm0, %v97_v9, 0.0 }
  0xcf   :  { %100 = vadd.xlane.f32.xlu1 %v99_v11 }
  0xd0   :  { %v98_v12 = vmul.f32 %v96_v10, %v96_v10 }
  0xd2   :  { %v102_v13 = vsel %vm85_vm0, %v98_v12, 0.0 }
  0xd3   :  { %103 = vadd.xlane.f32.xlu1 %v102_v13 }
 0x15c   :  { %v101_v19 = vpop.xlane.xlu1 %100 }
 0x15d   :  { %v105_v20 = vmul.f32 0.03125, %v101_v19 }
 0x15f   :  { %v107_v21 = vadd.f32 1e-05, %v105_v20 }
 0x160   :  { %v104_v22 = vpop.xlane.xlu1 %103 }
 0x161   :  { %487 = vrsqrt.f32 %v107_v21  ;;  %v106_v23 = vmul.f32 0.03125, %v104_v22 }
 0x163   :  { %v108_v24 = vadd.f32 1e-05, %v106_v23 }
 0x165   :  { %489 = vrsqrt.f32 %v108_v24 }
 0x16b   :  { %v488_v25 = vpop.eup %487 }
 0x16c   :  { %v111_v26 = vmul.f32 %v488_v25, %v95_v6 }
 0x16e   :  { %v120_v29 = vmul.f32 %v410_v27, %v111_v26 }
 0x16f   :  { %v490_v28 = vpop.eup %489 }
 0x170   :  { %v112_v30 = vmul.f32 %v490_v28, %v96_v10  ;;  %v129_v33 = vadd.f32 %v411_v31, %v120_v29 }
 0x172   :  { %v121_v32 = vmul.f32 %v410_v27, %v112_v30 }
 0x174   :  { %v130_v34 = vadd.f32 %v411_v31, %v121_v32 }
 0x176   :  { %v131_v35 = vpack.c.bf16 %v130_v34, %v129_v33 }
 0x178   :  { %132 = vst.msk [vmem:[#allocation2] sm:$0xff] %vm85_vm0, %v131_v35 }
 0x17f   :  { %v133_v37 = vld [vmem:[#allocation2] sm:$0xff] }
 0x180   :  { %450 = vmatmul.mubr.msk.bf16.vlgmr.msra.gmra.mrb[0].mxu0 %vm85_vm0, %v133_v37  ;;  %458 = vmatmul.mubr.msk.bf16.vlgmr.msra.gmra.mrb[0].mxu1 %vm85_vm0, %v133_v37 }
 0x181   :  { %462 = vmatpush3.bf16.msra.mxu0 %v485_v36  ;;  %465 = vmatprep.mubr.msk.bf16.mxu0 %vm639_vm1, %v638_v16 }
 0x182   :  { %463 = vmatprep.subr.bf16.mxu0 %v638_v16 }
 0x185   :  { %464 = vmatpush3.bf16.msra.mxu0 %v486_v38 }
 0x188   :  { %466 = vmatmul.mubr.msk.bf16.vlgmr.msra.gmra.mrb[4].mxu0 %vm85_vm0, %v133_v37 }
 0x253   :  { %v195_v41 = vpop.f32.mrb[0].mxu0  ;;  %v270_v42 = vpop.f32.mrb[0].mxu1 }
 0x254   :  { %v196_v43 = vadd.f32 %v412_v39, %v195_v41  ;;  %v271_v44 = vadd.f32 %v418_v40, %v270_v42  ;;  %v451_v45 = vpop.f32.mrb[1].mxu0  ;;  %v459_v46 = vpop.f32.mrb[1].mxu1 }
 0x255   :  { %v198_v47 = vpop.f32.mrb[2].mxu0  ;;  %v273_v48 = vpop.f32.mrb[2].mxu1 }
 0x256   :  { %v430_v49 = vpack.c.bf16 %v196_v43, %v196_v43  ;;  %v432_v50 = vpack.c.bf16 %v271_v44, %v271_v44  ;;  %v199_v51 = vadd.f32 %v412_v39, %v198_v47  ;;  %v274_v52 = vadd.f32 %v418_v40, %v273_v48  ;;  %v452_v53 = vpop.f32.mrb[3].mxu0  ;;  %v460_v54 = vpop.f32.mrb[3].mxu1 }
 0x258   :  { %v431_v55 = vpack.c.bf16 %v199_v51, %v199_v51  ;;  %v433_v56 = vpack.c.bf16 %v274_v52, %v274_v52  ;;  %211 = vst.msk [vmem:[#allocation9] sm:$0xf] %vm210_vm2, %v430_v49  ;;  %285 = vst.msk [vmem:[#allocation10] sm:$0xf] %vm210_vm2, %v432_v50 }
 0x25a   :  { %212 = vst.msk [vmem:[#allocation9 + $0x4] sm:$0xf] %vm210_vm2, %v431_v55  ;;  %286 = vst.msk [vmem:[#allocation10 + $0x4] sm:$0xf] %vm210_vm2, %v433_v56 }
 0x25b   :  { %v344_v58 = vpop.f32.mrb[4].mxu0 }
 0x25c   :  { %568 = shalt.err (!%p565_p0)
}
 0x25d   :  { %s569_s17 = scalar_lea.hbm %s845_s10, 128 }
 0x25e   :  { %p570_p1 = scmp.ne.s32.totalorder %s845_s10, %s569_s17  ;;  %p573_p2 = scmp.lt.u32.totalorder %s569_s17, %s845_s10 }
 0x260   :  { %p575_p3 = pnand %p573_p2, %p570_p1 }
 0x262   :  { %578 = shalt.err (!%p575_p3)
}
 0x263   :  { %384 = dma.vmem_to_hbm [thread:$0]  %s379_s29, 128, %s845_s10, [#allocation11], %s632_s27, %s632_s27, %s633_s28   ;;  %v345_v59 = vadd.f32 %v424_v57, %v344_v58  ;;  %v467_v60 = vpop.f32.mrb[5].mxu0 }
 0x264   :  { %s579_s21 = scalar_lea.vmem %s779_s30, 128  ;;  %p584_p5 = scmp.lt.s32.totalorder %s779_s30, %s779_s30 }
 0x265   :  { %p580_p4 = scmp.ne.s32.totalorder %s779_s30, %s579_s21  ;;  %p585_p6 = scmp.lt.s32.totalorder %s579_s21, %s579_s21 }
 0x267   :  { %p586_p7 = por %p585_p6, %p584_p5 }
 0x269   :  { %p587_p8 = pnand %p586_p7, %p580_p4 }
 0x26b   :  { %590 = shalt.err (!%p587_p8)
}
 0x26c   :  { %s591_s18 = scalar_lea.hbm %s844_s9, 128 }
 0x26d   :  { %p592_p9 = scmp.ne.s32.totalorder %s844_s9, %s591_s18  ;;  %p595_p10 = scmp.lt.u32.totalorder %s591_s18, %s844_s9 }
 0x26f   :  { %p597_p11 = pnand %p595_p10, %p592_p9 }
 0x271   :  { %600 = shalt.err (!%p597_p11)
}
 0x272   :  { %372 = dma.vmem_to_hbm [thread:$0]  %s779_s30, 128, %s844_s9, [#allocation5], %s632_s27, %s632_s27, %s633_s28   ;;  %v347_v61 = vpop.f32.mrb[6].mxu0  ;;  %v434_v62 = vpack.c.bf16 %v345_v59, %v345_v59 }
 0x273   :  { %s642_s26 = smov [#allocation12]   ;;  %v348_v63 = vadd.f32 %v424_v57, %v347_v61  ;;  %v468_v0 = vpop.f32.mrb[7].mxu0 }
 0x274   :  { %s390_s5 = sshll.u32 %s642_s26, 4  ;;  %359 = vst.msk [vmem:[#allocation12] sm:$0xf] %vm210_vm2, %v434_v62  ;;  %s391_s5 = int_to_ptr.vmem [resolvable:$true] %s390_s5 }
 0x275   :  { %v435_v1 = vpack.c.bf16 %v348_v63, %v348_v63  ;;  %s601_s29 = scalar_lea.vmem %s391_s5, 128  ;;  %p606_p13 = scmp.lt.s32.totalorder %s391_s5, %s391_s5 }
 0x276   :  { %p602_p12 = scmp.ne.s32.totalorder %s391_s5, %s601_s29  ;;  %p607_p0 = scmp.lt.s32.totalorder %s601_s29, %s601_s29 }
 0x277   :  { %360 = vst.msk [vmem:[#allocation12 + $0x4] sm:$0xf] %vm210_vm2, %v435_v1 }
 0x278   :  { %p608_p1 = por %p607_p0, %p606_p13 }
 0x27a   :  { %p609_p2 = pnand %p608_p1, %p602_p12 }
 0x27c   :  { %612 = shalt.err (!%p609_p2)
}
 0x27d   :  { %s613_s30 = scalar_lea.hbm %s846_s11, 128 }
 0x27e   :  { %p614_p3 = scmp.ne.s32.totalorder %s846_s11, %s613_s30  ;;  %p617_p4 = scmp.lt.u32.totalorder %s613_s30, %s846_s11 }
 0x280   :  { %p619_p5 = pnand %p617_p4, %p614_p3 }
 0x282   :  { %622 = shalt.err (!%p619_p5)
}
 0x283   :  { %396 = dma.vmem_to_hbm [thread:$0]  %s391_s5, 128, %s846_s11, [#allocation11], %s632_s27, %s632_s27, %s633_s28  }
 0x284   :  { %627 = dma.done.wait [#allocation5], 128  }
 0x285   :  { %628 = vsyncadd [#allocation5], 4294967168 }
 0x286   :  { %629 = dma.done.wait [#allocation11], 256  }
 0x287   :  { %630 = vsyncadd [#allocation11], 4294967040 }
 0x288   :  { %406 = vsyncpa [#allocation4], 1 }
 0x289   :  { %407 = vsyncpa [#allocation7], 1 }
 0x28a   :  { %408 = vsyncpa [#allocation5], 1 }
 0x28b   :  { %409 = vsyncpa [#allocation11], 1 }

</bundles_post_ra>
